<compile_context>
chip_gen: v7x
topology: tpu7x:2x2x1
jax: 0.10.0
libtpu: 0.0.40
codegen_flags: <defaults>
</compile_context>

<pallas_src>
import functools

import jax
import jax.numpy as jnp
from jax.experimental import pallas as pl
from jax.experimental.pallas import tpu as pltpu


def _round_up(x: int, m: int) -> int:
    return (x + m - 1) // m * m


def mlp_kernel(x_ref, w_ref, b_ref, out_ref):
    # x_ref  : (tile_rows, 128) VMEM, flat interleaved [x00, x01, x10, x11, ...]
    # w_ref  : (2,) SMEM    b_ref: (1,) SMEM
    # out_ref: (tile_rows, 128) VMEM, interleaved [p0, 1-p0, p1, 1-p1, ...]
    x = x_ref[...].astype(jnp.float32)

    lane = jax.lax.broadcasted_iota(jnp.int32, x.shape, 1)
    even = (lane & 1) == 0                       # even lane -> feature 0 / p

    # Per-lane weight, then add the pair partner with an XLU roll.
    # Lanes (2j, 2j+1) form a sample's pair; 128 is even so pairs never
    # straddle a row, and the roll wrap-around lanes are never selected.
    q = x * jnp.where(even, w_ref[0], w_ref[1])
    # roll by 127 == roll by -1 (mod 128): s[i] = q[i] + q[i+1] on even lanes.
    s = q + pltpu.roll(q, 127, axis=1)

    # Exact sigmoid (EUP exp + VPU divide); valid on even lanes.
    p = 1.0 / (1.0 + jnp.exp(-(s + b_ref[0])))

    # Even lanes: p ; odd lanes: 1 - p of their pair (p[i-1] via roll by +1).
    out = jnp.where(even, p, 1.0 - pltpu.roll(p, 1, axis=1))
    out_ref[...] = out.astype(out_ref.dtype)


@functools.partial(jax.jit, static_argnames=("max_tile_rows",))
def mlp_forward(x, weight, bias, *, max_tile_rows: int = 8192):
    """x: (B, 2), weight: (1, 2), bias: (1,) -> (B, 2) = [sigmoid(xW^T+b), 1-sigmoid]."""
    B, n_in = x.shape
    if n_in != 2:
        # TODO(synk): generalize the interleaved-lane scheme beyond n_inputs == 2.
        raise NotImplementedError("kernel is specialized for n_inputs == 2")
    w = weight.reshape(n_in).astype(jnp.float32)
    b = bias.reshape(1).astype(jnp.float32)

    # Flat interleaved lane-dense view (free reshape of the contiguous array).
    n_flat = B * 2
    granule = 8 * 128                            # minimum (sublane, lane) f32 tile
    padded = _round_up(n_flat, granule)
    x_flat = x.reshape(n_flat)                   # native dtype; cast in-kernel
    if padded != n_flat:                         # pad only to the 1024-elem granule
        x_flat = jnp.pad(x_flat, (0, padded - n_flat))
    rows = padded // 128
    tile_rows = min(max_tile_rows, rows)         # both are multiples of 8
    grid_n = pl.cdiv(rows, tile_rows)            # ragged last tile masked by Pallas

    out2d = pl.pallas_call(
        mlp_kernel,
        out_shape=jax.ShapeDtypeStruct((rows, 128), x.dtype),
        grid_spec=pltpu.PrefetchScalarGridSpec(
            num_scalar_prefetch=0,
            grid=(grid_n,),
            in_specs=[
                pl.BlockSpec((tile_rows, 128), lambda i: (i, 0)),      # x tile (VMEM)
                pl.BlockSpec(memory_space=pltpu.MemorySpace.SMEM),     # weight (SMEM)
                pl.BlockSpec(memory_space=pltpu.MemorySpace.SMEM),     # bias (SMEM)
            ],
            out_specs=pl.BlockSpec((tile_rows, 128), lambda i: (i, 0)),
        ),
        compiler_params=pltpu.CompilerParams(
            dimension_semantics=("parallel",),   # no carry; v7x shards over 2 TCs
            vmem_limit_bytes=48 * 1024 * 1024,   # fits v5e/v6e/v7x (per-TC 64 MiB)
        ),
    )(x_flat.reshape(rows, 128), w, b)

    out_flat = out2d.reshape(padded)
    if padded != n_flat:
        out_flat = out_flat[:n_flat]
    return out_flat.reshape(B, 2)


if __name__ == "__main__":
    key = jax.random.PRNGKey(0)
    kx, kw, kb = jax.random.split(key, 3)

    batch, n_inputs = 8, 2

    # Deterministic init mimicking nn.Linear: U(-1/sqrt(fan_in), +1/sqrt(fan_in))
    bound = 1.0 / jnp.sqrt(jnp.float32(n_inputs))
    weight = jax.random.uniform(kw, (1, n_inputs), jnp.float32, -bound, bound)
    bias = jax.random.uniform(kb, (1,), jnp.float32, -bound, bound)

    x = jax.random.normal(kx, (batch, n_inputs), jnp.float32)

    out = mlp_forward(x, weight, bias)
    out = jax.block_until_ready(out)

    # Pure-JAX reference
    z_ref = x @ weight.T + bias
    p_ref = jax.nn.sigmoid(z_ref)
    ref = jnp.concatenate([p_ref, 1.0 - p_ref], axis=1)

    assert out.shape == (batch, 2)
    assert jnp.allclose(out, ref, atol=1e-5, rtol=1e-5), (out, ref)

    print("KERNEL_OK")
</pallas_src>

<mosaic_0001>
module attributes {stable_mosaic.version = 11 : i64} {
  func.func @mlp_kernel(%arg0: i32, %arg1: memref<8x128xf32, #tpu.memory_space<vmem>>, %arg2: memref<2xf32, #tpu.memory_space<smem>>, %arg3: memref<1xf32, #tpu.memory_space<smem>>, %arg4: memref<8x128xf32, #tpu.memory_space<vmem>>) attributes {dimension_semantics = [#tpu.dimension_semantics<parallel>], iteration_bounds = array<i64: 1>, scalar_prefetch = 0 : i64, scratch_operands = 0 : i64, tpu.core_type = #tpu.core_type<tc>, window_params = [{transform_indices = @transform_0, window_bounds = array<i64: 8, 128>}, {transform_indices = @transform_1, window_bounds = array<i64: 2>}, {transform_indices = @transform_2, window_bounds = array<i64: 1>}, {transform_indices = @transform_3, window_bounds = array<i64: 8, 128>}]} {
    %c0 = arith.constant 0 : index
    %c0_0 = arith.constant 0 : index
    %0 = vector.load %arg1[%c0, %c0_0] : memref<8x128xf32, #tpu.memory_space<vmem>>, vector<8x128xf32>
    %1 = tpu.iota {dimensions = array<i32: 1>} : vector<8x128xi32>
    %c1_i32 = arith.constant 1 : i32
    %2 = vector.broadcast %c1_i32 : i32 to vector<8x128xi32>
    %3 = arith.andi %1, %2 : vector<8x128xi32>
    %c0_i32 = arith.constant 0 : i32
    %4 = vector.broadcast %c0_i32 : i32 to vector<8x128xi32>
    %5 = arith.cmpi eq, %3, %4 : vector<8x128xi32>
    %c0_1 = arith.constant 0 : index
    %6 = memref.load %arg2[%c0_1] : memref<2xf32, #tpu.memory_space<smem>>
    %c1 = arith.constant 1 : index
    %7 = memref.load %arg2[%c1] : memref<2xf32, #tpu.memory_space<smem>>
    %8 = vector.broadcast %6 : f32 to vector<8x128xf32>
    %9 = vector.broadcast %7 : f32 to vector<8x128xf32>
    %10 = arith.select %5, %8, %9 : vector<8x128xi1>, vector<8x128xf32>
    %11 = arith.mulf %0, %10 : vector<8x128xf32>
    %c127_i32 = arith.constant 127 : i32
    %12 = tpu.dynamic_rotate %11 by %c127_i32 dim 1 : vector<8x128xf32>, i32 -> vector<8x128xf32>
    %13 = arith.addf %11, %12 : vector<8x128xf32>
    %c0_2 = arith.constant 0 : index
    %14 = memref.load %arg3[%c0_2] : memref<1xf32, #tpu.memory_space<smem>>
    %15 = vector.broadcast %14 : f32 to vector<8x128xf32>
    %16 = arith.addf %13, %15 : vector<8x128xf32>
    %cst = arith.constant 0.000000e+00 : f32
    %17 = vector.broadcast %cst : f32 to vector<8x128xf32>
    %18 = arith.subf %17, %16 : vector<8x128xf32>
    %19 = math.exp %18 : vector<8x128xf32>
    %cst_3 = arith.constant 1.000000e+00 : f32
    %20 = vector.broadcast %cst_3 : f32 to vector<8x128xf32>
    %21 = arith.addf %20, %19 : vector<8x128xf32>
    %cst_4 = arith.constant 1.000000e+00 : f32
    %22 = vector.broadcast %cst_4 : f32 to vector<8x128xf32>
    %23 = arith.divf %22, %21 : vector<8x128xf32>
    %c1_i32_5 = arith.constant 1 : i32
    %24 = tpu.dynamic_rotate %23 by %c1_i32_5 dim 1 : vector<8x128xf32>, i32 -> vector<8x128xf32>
    %cst_6 = arith.constant 1.000000e+00 : f32
    %25 = vector.broadcast %cst_6 : f32 to vector<8x128xf32>
    %26 = arith.subf %25, %24 : vector<8x128xf32>
    %27 = arith.select %5, %23, %26 : vector<8x128xi1>, vector<8x128xf32>
    %c0_7 = arith.constant 0 : index
    %c0_8 = arith.constant 0 : index
    %28 = vector.load %arg4[%c0_7, %c0_8] : memref<8x128xf32, #tpu.memory_space<vmem>>, vector<8x128xf32>
    tpu.vector_store %arg4[%c0_7, %c0_8], %27 {strides = array<i32>} : memref<8x128xf32, #tpu.memory_space<vmem>>, vector<8x128xf32>,
    return
  }
  func.func @transform_0(%arg0: i32) -> (i32, i32) {
    %c0_i32 = arith.constant 0 : i32
    %c0_i32_0 = arith.constant 0 : i32
    return %arg0, %c0_i32 : i32, i32
  }
  func.func @transform_1(%arg0: i32) -> i32 {
    %c0_i32 = arith.constant 0 : i32
    %c0_i32_0 = arith.constant 0 : i32
    return %c0_i32 : i32
  }
  func.func @transform_2(%arg0: i32) -> i32 {
    %c0_i32 = arith.constant 0 : i32
    %c0_i32_0 = arith.constant 0 : i32
    return %c0_i32 : i32
  }
  func.func @transform_3(%arg0: i32) -> (i32, i32) {
    %c0_i32 = arith.constant 0 : i32
    %c0_i32_0 = arith.constant 0 : i32
    return %arg0, %c0_i32 : i32, i32
  }
}

</mosaic_0001>

<bundles_post_ra>
// kernel: mlp_forward.1
= control target key start
LH: loop header
LB: loop body
LE: loop exit
PB: predicated region body
PF: predicated region fallthrough
CT: control target
= control target key end

     0   :  { %9 = vsyncpa [#allocation4], 0  ;;  %s126_s0 = inlined_call_operand.vmem [shape: f32[8,128], index: 0, kind: input, shape index: {}]   ;;  %s127_s1 = inlined_call_operand.vmem [shape: f32[2], index: 1, kind: input, shape index: {}]   ;;  %s128_s2 = inlined_call_operand.<no memory space> [shape: f32[1], index: 2, kind: input, shape index: {}]   ;;  %s129_s3 = inlined_call_operand.vmem [shape: f32[8,128], index: 3, kind: output, shape index: {}]  }
   0x1   :  { %s18_s14 = sshll.u32 %s127_s1, 4  ;;  %s19_s14 = int_to_ptr.vmem [resolvable:$true] %s18_s14 }
   0x2   :  { %s69_s15 = scalar_lea.vmem %s19_s14, 16  ;;  %p74_p1 = scmp.lt.s32.totalorder %s19_s14, %s19_s14 }
   0x3   :  { %p70_p0 = scmp.ne.s32.totalorder %s19_s14, %s69_s15  ;;  %p75_p2 = scmp.lt.s32.totalorder %s69_s15, %s69_s15 }
   0x5   :  { %p76_p3 = por %p75_p2, %p74_p1 }
   0x7   :  { %p77_p4 = pnand %p76_p3, %p70_p0 }
   0x9   :  { %80 = shalt.err (!%p77_p4)
}
   0xa   :  { %s83_s16 = smov [#allocation3]  }
   0xb   :  { %21 = dma.vmem_to_smem %s19_s14, 16, %s83_s16, [#allocation4]  }
   0xc   :  { %81 = dma.done.wait [#allocation4], 16  }
   0xd   :  { %82 = vsyncadd [#allocation4], 4294967280 }
   0xe   :  { %27 = sfence }
   0xf   :  { %v29_v0 = vlaneseq  ;;  %s33_s17 = sld [smem:[#allocation3]]  ;;  %s61_s18 = sld [smem:[#allocation3 + $0x1]]  ;;  %v28_v3 = vld [vmem:[%s126_s0] sm:$0xff]  ;;  %v43_v9 = vstv %s128_s2 }
  0x10   :  { %s84_s20 = smov 127   ;;  %s85_s0 = smov 1  }
  0x11   :  { %v30_v1 = vand.u32 127, %v29_v0 }
  0x13   :  { %v31_v2 = vand.u32 1, %v30_v1 }
  0x15   :  { %vm112_vm0 = vcmp.eq.s32.totalorder %v31_v2, 0  ;;  %v35_v5 = vstv %s33_s17  ;;  %v36_v6 = vstv %s61_s18 }
  0x16   :  { %v37_v7 = vsel %vm112_vm0, %v35_v5, %v36_v6 }
  0x17   :  { %v38_v8 = vmul.f32 %v37_v7, %v28_v3 }
  0x19   :  { %39 = vrot.lane.b32.xlu0 %v38_v8, %s84_s20 }
  0x8b   :  { %v40_v10 = vpop.permute.xlu0 %39 }
  0x8c   :  { %v41_v11 = vadd.f32 %v40_v10, %v38_v8 }
  0x8e   :  { %v44_v12 = vadd.f32 %v43_v9, %v41_v11 }
  0x90   :  { %v45_v13 = vsub.f32 0.0, %v44_v12 }
  0x92   :  { %v46_v14 = vmul.f32 1.442695, %v45_v13 }
  0x94   :  { %65 = vpow2.f32 %v46_v14 }
  0x9e   :  { %v66_v15 = vpop.eup %65 }
  0x9f   :  { %v48_v16 = vadd.f32 1.0, %v66_v15 }
  0xa1   :  { %67 = vrcp.f32 %v48_v16 }
  0xab   :  { %v68_v17 = vpop.eup %67 }
  0xac   :  { %51 = vrot.lane.b32.xlu0 %v68_v17, %s85_s0 }
 0x11e   :  { %v52_v18 = vpop.permute.xlu0 %51 }
 0x11f   :  { %v53_v19 = vsub.f32 1.0, %v52_v18 }
 0x121   :  { %v54_v20 = vsel %vm112_vm0, %v68_v17, %v53_v19 }
 0x122   :  { %55 = vst [vmem:[%s129_s3] sm:$0xff] %v54_v20 }
 0x123   :  { %60 = vsyncpa [#allocation4], 1 }

</bundles_post_ra>
